<compile_context>
chip_gen: v7x
topology: tpu7x:2x2x1
jax: 0.10.0
libtpu: 0.0.40
codegen_flags: <defaults>
</compile_context>

<pallas_src>
import functools

import jax
import jax.numpy as jnp
from jax.experimental import pallas as pl
from jax.experimental.pallas import tpu as pltpu


def _round_up(x, m):
    return (x + m - 1) // m * m


def _silu(x):
    # SiLU(x) = x * sigmoid(x); sigmoid(x) = 0.5 * (tanh(x/2) + 1)  (exact).
    # tanh runs on the EUP slot; the remaining ops are cheap VPU mul/add.
    return x * (0.5 * (jnp.tanh(0.5 * x) + 1.0))


def time_embedding_kernel(t_ref, p_ref, o_ref, *, h1, h2, ho):
    """Whole MLP for one row-block; all operands live in VMEM.

    t_ref : (bm, 1)              f32, bm a multiple of 8
    p_ref : (8 + H1 + H2, H1)    packed params (f32 or bf16), zero-padded:
              rows 0..3          : w1, b1, b2, b3 (1 row each)
              rows 4..7          : zero padding (sublane alignment)
              rows 8..8+H1       : w2   (H1 x H2 valid region)
              rows 8+H1..8+H1+H2 : w3   (H2 x HO valid region)
    o_ref : (bm, HO)             f32, HO a multiple of 128 (lane-dense stores)
    Zero padding is preserved through SiLU (silu(0) == 0), so padded lanes
    contribute nothing to the matmuls and padded output lanes stay zero.
    """
    f32 = jnp.float32
    t = t_ref[...].astype(f32)                            # (bm, 1)

    # Header rows: cast once to f32 so layer 1 and both SiLUs stay on the f32
    # VPU/EUP path (v5e has no bf16 VPU/EUP).  No-op for f32-packed params.
    w1 = p_ref[0:1, :].astype(f32)                        # (1, H1)
    b1 = p_ref[1:2, :].astype(f32)                        # (1, H1)
    b2 = p_ref[2:3, 0:h2].astype(f32)                     # (1, H2)
    b3 = p_ref[3:4, 0:ho].astype(f32)                     # (1, HO)

    # Layer 1: in_features == 1  ->  VPU broadcast multiply, no MXU needed.
    a1 = _silu(t * w1 + b1)                               # (bm, H1) f32

    # Layer 2: (bm,H1) @ (H1,H2) on the MXU, f32 accumulation.  Activations
    # are cast to the packed weight dtype (native bf16 path when packed bf16).
    w2 = p_ref[8:8 + h1, 0:h2]
    a2 = jnp.dot(a1.astype(w2.dtype), w2, preferred_element_type=f32)
    a2 = _silu(a2 + b2)                                   # (bm, H2) f32

    # Layer 3: (bm,H2) @ (H2,HO) + b3.
    w3 = p_ref[8 + h1:8 + h1 + h2, 0:ho]
    a3 = jnp.dot(a2.astype(w3.dtype), w3, preferred_element_type=f32) + b3

    o_ref[...] = a3.astype(o_ref.dtype)                   # full-lane store


def pack_params(w1, b1, w2, b2, w3, b3, *, dtype=jnp.float32):
    """One-time packing of the 6 parameter tensors into ONE tile-aligned buffer.

    Weights are stored (in_features, out_features), i.e. transposed vs. the
    PyTorch nn.Linear .weight layout:
      w1 (1, 4D)   b1 (1, 4D)
      w2 (4D, 2D)  b2 (1, 2D)
      w3 (2D, D)   b3 (1, D)
    Returns (packed, (D, H1, H2, HO)) where H1/H2/HO are the 128-lane-rounded
    widths and `packed` has shape (8 + H1 + H2, H1).  Use dtype=jnp.bfloat16
    to halve the per-call weight DMA (kernel keeps f32 accumulation).
    """
    d4, d2, d = w1.shape[-1], w2.shape[-1], w3.shape[-1]
    h1, h2, ho = (_round_up(x, 128) for x in (d4, d2, d))
    wc = h1  # h1 >= h2 >= ho, so one lane width fits every row.

    def put(a, rows):
        a = jnp.asarray(a, jnp.float32).reshape(-1, a.shape[-1])
        return jnp.pad(a, ((0, rows - a.shape[0]), (0, wc - a.shape[1])))

    packed = jnp.concatenate(
        [put(w1, 1), put(b1, 1), put(b2, 1), put(b3, 1),
         jnp.zeros((4, wc), jnp.float32),        # pad header to 8 sublanes
         put(w2, h1), put(w3, h2)],
        axis=0).astype(dtype)                    # (8 + H1 + H2, WC)
    return packed, (d, h1, h2, ho)


def time_embedding(t, params, dims, *, block_m=512):
    """Pallas forward pass.  t: (M, 1) or (M,) f32  ->  (M, D) f32.

    M may be (num_timesteps * batch): fold diffusion steps into the row dim to
    amortize launch/DMA overhead.  Call this inside the caller's jit so the
    (cheap) pad / output slice fuse with surrounding ops.
    """
    d, h1, h2, ho = dims
    m = t.shape[0]
    t = t.astype(jnp.float32).reshape(m, 1)

    bm = min(_round_up(m, 8), _round_up(block_m, 8))   # rows per grid step
    mp = _round_up(m, bm)
    if mp != m:                                        # skip pad when aligned
        t = jnp.pad(t, ((0, mp - m), (0, 0)))

    out = pl.pallas_call(
        functools.partial(time_embedding_kernel, h1=h1, h2=h2, ho=ho),
        out_shape=jax.ShapeDtypeStruct((mp, ho), jnp.float32),
        grid=(mp // bm,),
        in_specs=[
            pl.BlockSpec((bm, 1), lambda i: (i, 0)),          # row block of t
            pl.BlockSpec(params.shape, lambda i: (0, 0)),     # VMEM-resident
        ],
        out_specs=pl.BlockSpec((bm, ho), lambda i: (i, 0)),
        compiler_params=pltpu.CompilerParams(
            dimension_semantics=("parallel",)),               # v7x: 2 TCs
    )(t, params)
    return out[:m, :d]


def reference(t, w1, b1, w2, b2, w3, b3):
    h1 = jax.nn.silu(t @ w1 + b1)
    h2 = jax.nn.silu(h1 @ w2 + b2)
    return h2 @ w3 + b3


if __name__ == "__main__":
    embedding_dim = 32          # D
    batch = 8                   # rows per diffusion step
    timesteps = 16              # fold T steps into the M dimension

    key = jax.random.PRNGKey(0)
    kt, k1, k2, k3, k4, k5, k6 = jax.random.split(key, 7)

    # Deterministic synthetic parameters (Linear weights stored as (in, out)).
    t = jax.random.uniform(kt, (timesteps * batch, 1), dtype=jnp.float32)
    w1 = jax.random.normal(k1, (1, 4 * embedding_dim), jnp.float32) * 0.5
    b1 = jax.random.normal(k2, (1, 4 * embedding_dim), jnp.float32) * 0.1
    w2 = jax.random.normal(k3, (4 * embedding_dim, 2 * embedding_dim), jnp.float32) * 0.1
    b2 = jax.random.normal(k4, (1, 2 * embedding_dim), jnp.float32) * 0.1
    w3 = jax.random.normal(k5, (2 * embedding_dim, embedding_dim), jnp.float32) * 0.1
    b3 = jax.random.normal(k6, (1, embedding_dim), jnp.float32) * 0.1

    ref = reference(t, w1, b1, w2, b2, w3, b3)

    # --- f32 params, strict tolerance.  block_m=64 -> grid=(2,) to exercise
    # the gridded / VMEM-resident-weights / megacore-parallel path. ----------
    params_f32, dims = pack_params(w1, b1, w2, b2, w3, b3)
    params_f32 = jax.block_until_ready(params_f32)     # one-time packing
    fwd_f32 = jax.jit(functools.partial(time_embedding, dims=dims, block_m=64))
    out_f32 = jax.block_until_ready(fwd_f32(t, params_f32))
    assert out_f32.shape == (timesteps * batch, embedding_dim)
    assert jnp.allclose(out_f32, ref, atol=1e-4, rtol=1e-4), "f32 mismatch vs reference"

    # --- bf16-packed params: halves the weight DMA, native bf16 MXU path.
    # Looser tolerance accounts for the documented bf16 weight quantization. --
    params_bf16, dims_bf16 = pack_params(w1, b1, w2, b2, w3, b3, dtype=jnp.bfloat16)
    params_bf16 = jax.block_until_ready(params_bf16)
    fwd_bf16 = jax.jit(functools.partial(time_embedding, dims=dims_bf16))
    out_bf16 = jax.block_until_ready(fwd_bf16(t, params_bf16))
    assert out_bf16.shape == (timesteps * batch, embedding_dim)
    assert jnp.allclose(out_bf16, ref, atol=2e-2, rtol=2e-2), "bf16 mismatch vs reference"

    print("KERNEL_OK")
</pallas_src>

<mosaic_0001>
module attributes {stable_mosaic.version = 11 : i64} {
  func.func @time_embedding_kernel(%arg0: i32, %arg1: memref<64x1xf32, #tpu.memory_space<vmem>>, %arg2: memref<264x128xf32, #tpu.memory_space<vmem>>, %arg3: memref<64x128xf32, #tpu.memory_space<vmem>>) attributes {dimension_semantics = [#tpu.dimension_semantics<parallel>], iteration_bounds = array<i64: 2>, scalar_prefetch = 0 : i64, scratch_operands = 0 : i64, tpu.core_type = #tpu.core_type<tc>, window_params = [{transform_indices = @transform_0, window_bounds = array<i64: 64, 1>}, {pipeline_mode = #tpu.pipeline_mode<synchronous>, transform_indices = @transform_1, window_bounds = array<i64: 264, 128>}, {transform_indices = @transform_2, window_bounds = array<i64: 64, 128>}]} {
    %c0 = arith.constant 0 : index
    %c0_0 = arith.constant 0 : index
    %0 = vector.load %arg1[%c0, %c0_0] : memref<64x1xf32, #tpu.memory_space<vmem>>, vector<64x1xf32>
    %c0_1 = arith.constant 0 : index
    %c0_2 = arith.constant 0 : index
    %1 = vector.load %arg2[%c0_1, %c0_2] : memref<264x128xf32, #tpu.memory_space<vmem>>, vector<1x128xf32>
    %c1 = arith.constant 1 : index
    %c0_3 = arith.constant 0 : index
    %2 = vector.load %arg2[%c1, %c0_3] : memref<264x128xf32, #tpu.memory_space<vmem>>, vector<1x128xf32>
    %c2 = arith.constant 2 : index
    %c0_4 = arith.constant 0 : index
    %3 = vector.load %arg2[%c2, %c0_4] : memref<264x128xf32, #tpu.memory_space<vmem>>, vector<1x128xf32>
    %c3 = arith.constant 3 : index
    %c0_5 = arith.constant 0 : index
    %4 = vector.load %arg2[%c3, %c0_5] : memref<264x128xf32, #tpu.memory_space<vmem>>, vector<1x128xf32>
    %5 = vector.broadcast %0 : vector<64x1xf32> to vector<64x128xf32>
    %6 = vector.broadcast %1 : vector<1x128xf32> to vector<64x128xf32>
    %7 = arith.mulf %5, %6 : vector<64x128xf32>
    %8 = vector.broadcast %2 : vector<1x128xf32> to vector<64x128xf32>
    %9 = arith.addf %7, %8 : vector<64x128xf32>
    %cst = arith.constant 5.000000e-01 : f32
    %10 = vector.broadcast %cst : f32 to vector<64x128xf32>
    %11 = arith.mulf %10, %9 : vector<64x128xf32>
    %12 = math.tanh %11 : vector<64x128xf32>
    %cst_6 = arith.constant 1.000000e+00 : f32
    %13 = vector.broadcast %cst_6 : f32 to vector<64x128xf32>
    %14 = arith.addf %12, %13 : vector<64x128xf32>
    %cst_7 = arith.constant 5.000000e-01 : f32
    %15 = vector.broadcast %cst_7 : f32 to vector<64x128xf32>
    %16 = arith.mulf %15, %14 : vector<64x128xf32>
    %17 = arith.mulf %9, %16 : vector<64x128xf32>
    %c8 = arith.constant 8 : index
    %c0_8 = arith.constant 0 : index
    %18 = vector.load %arg2[%c8, %c0_8] : memref<264x128xf32, #tpu.memory_space<vmem>>, vector<128x128xf32>
    %cst_9 = arith.constant dense<0.000000e+00> : vector<64x128xf32>
    %19 = tpu.matmul %17, %18, %cst_9 {dimension_numbers = #tpu.dot_dimension_numbers<[1], [0], [0], [1], [0, 0, 1, 1], [], []>} : vector<64x128xf32>, vector<128x128xf32>, vector<64x128xf32> -> vector<64x128xf32>
    %20 = vector.broadcast %3 : vector<1x128xf32> to vector<64x128xf32>
    %21 = arith.addf %19, %20 : vector<64x128xf32>
    %cst_10 = arith.constant 5.000000e-01 : f32
    %22 = vector.broadcast %cst_10 : f32 to vector<64x128xf32>
    %23 = arith.mulf %22, %21 : vector<64x128xf32>
    %24 = math.tanh %23 : vector<64x128xf32>
    %cst_11 = arith.constant 1.000000e+00 : f32
    %25 = vector.broadcast %cst_11 : f32 to vector<64x128xf32>
    %26 = arith.addf %24, %25 : vector<64x128xf32>
    %cst_12 = arith.constant 5.000000e-01 : f32
    %27 = vector.broadcast %cst_12 : f32 to vector<64x128xf32>
    %28 = arith.mulf %27, %26 : vector<64x128xf32>
    %29 = arith.mulf %21, %28 : vector<64x128xf32>
    %c136 = arith.constant 136 : index
    %c0_13 = arith.constant 0 : index
    %30 = vector.load %arg2[%c136, %c0_13] : memref<264x128xf32, #tpu.memory_space<vmem>>, vector<128x128xf32>
    %cst_14 = arith.constant dense<0.000000e+00> : vector<64x128xf32>
    %31 = tpu.matmul %29, %30, %cst_14 {dimension_numbers = #tpu.dot_dimension_numbers<[1], [0], [0], [1], [0, 0, 1, 1], [], []>} : vector<64x128xf32>, vector<128x128xf32>, vector<64x128xf32> -> vector<64x128xf32>
    %32 = vector.broadcast %4 : vector<1x128xf32> to vector<64x128xf32>
    %33 = arith.addf %31, %32 : vector<64x128xf32>
    %c0_15 = arith.constant 0 : index
    %c0_16 = arith.constant 0 : index
    %34 = vector.load %arg3[%c0_15, %c0_16] : memref<64x128xf32, #tpu.memory_space<vmem>>, vector<64x128xf32>
    tpu.vector_store %arg3[%c0_15, %c0_16], %33 {strides = array<i32>} : memref<64x128xf32, #tpu.memory_space<vmem>>, vector<64x128xf32>,
    return
  }
  func.func @transform_0(%arg0: i32) -> (i32, i32) {
    %c0_i32 = arith.constant 0 : i32
    %c0_i32_0 = arith.constant 0 : i32
    return %arg0, %c0_i32 : i32, i32
  }
  func.func @transform_1(%arg0: i32) -> (i32, i32) {
    %c0_i32 = arith.constant 0 : i32
    %c0_i32_0 = arith.constant 0 : i32
    %c0_i32_1 = arith.constant 0 : i32
    return %c0_i32, %c0_i32_0 : i32, i32
  }
  func.func @transform_2(%arg0: i32) -> (i32, i32) {
    %c0_i32 = arith.constant 0 : i32
    %c0_i32_0 = arith.constant 0 : i32
    return %arg0, %c0_i32 : i32, i32
  }
}

</mosaic_0001>

<bundles_post_ra>
// kernel: time_embedding.1
= control target key start
LH: loop header
LB: loop body
LE: loop exit
PB: predicated region body
PF: predicated region fallthrough
CT: control target
= control target key end

     0   :  { %7 = vsyncpa [#allocation3], 0  ;;  %s976_s9 = smov 0   ;;  %s1042_s0 = inlined_call_operand.vmem [shape: f32[128,1], index: 0, kind: input, shape index: {}]   ;;  %s1043_s1 = inlined_call_operand.hbm [shape: f32[264,128], index: 1, kind: input, shape index: {}]   ;;  %s1044_s2 = inlined_call_operand.vmem [shape: f32[128,128], index: 2, kind: output, shape index: {}]  }
   0x1 LB: > { %s644_s10 = sadd.s32 4294967295, %s955_s9   ;;  %p646_p0 = scmp.ge.s32.totalorder %s955_s9, 1  ;;  %s955_s9 = sphi %s976_s9, %s13_s9  }
   0x2   : > { %p91_p1 = scmp.lt.s32.totalorder %s955_s9, 3  ;;  %s957_s11 = smov [#allocation2]  }
   0x3   : > { %s103_s12 = sshll.u32 %s957_s11, 4  ;;  %p990_p3 = scmp.eq.s32.totalorder %s644_s10, 0  ;;  %s104_s12 = int_to_ptr.vmem [resolvable:$true] %s103_s12 }
   0x4   : > { %p984_p2 = pnand %p646_p0, %p91_p1  ;;  %s917_s18 = scalar_lea.hbm %s1043_s1, 4224 }
   0x5   : > { %s1049_s14 = scalar_select %p990_p3, 1, 0 }
   0x6   : > { %s1048_s13 = scalar_select %p984_p2, 1, 0 }
   0x7   : > { %p865_p4 = pneg %p984_p2  ;;  %p918_p6 = scmp.ne.s32.totalorder %s1043_s1, %s917_s18 }
   0x8   : > { %p924_p10 = scmp.lt.u32.totalorder %s917_s18, %s1043_s1 }
   0x9   : > { %p998_p5 = pnand %p990_p3, %p865_p4 }
   0xb   : > { %p919_p7 = pneg %p998_p5 }
   0xd   : > { %p920_p8 = pnand %p919_p7, %p918_p6 }
   0xf   : > { %p921_p9 = pneg %p920_p8 }
  0x11   : > { %p926_p11 = pnand %p924_p10, %p921_p9 }
  0x13   : > { %929 = shalt.err (!%p926_p11)
}
  0x14   : > { %s930_s23 = scalar_lea.vmem %s104_s12, 4224  ;;  %p938_p1 = scmp.lt.s32.totalorder %s104_s12, %s104_s12 }
  0x15   : > { %p931_p12 = scmp.ne.s32.totalorder %s104_s12, %s930_s23  ;;  %p939_p4 = scmp.lt.s32.totalorder %s930_s23, %s930_s23 }
  0x17   : > { %p933_p13 = pnand %p931_p12, %p919_p7  ;;  %p940_p3 = por %p939_p4, %p938_p1 }
  0x19   : > { %p934_p0 = pneg %p933_p13 }
  0x1b   : > { %p941_p2 = pnand %p940_p3, %p934_p0 }
  0x1d   : > { %944 = shalt.err (!%p941_p2)
}
  0x1e   : > { %s958_s24 = smov 128   ;;  %s959_s25 = smov 8  }
  0x1f   : > { %868 = dma.hbm_to_vmem [thread:$0]  (!%p998_p5), %s1043_s1, 4224, %s104_s12, [#allocation3], %s958_s24, %s958_s24, %s959_s25  }
  0x20   : > { %p1051_p6 = scmp.ne.s32.totalorder %s1048_s13, 0 }
  0x21   : > { %p1052_p8 = scmp.ne.s32.totalorder (!%p1051_p6), %s1049_s14, 0 }
  0x22   : > { %128 = sbr.rel (%p1051_p6) target bundleno = 668 (0x29c), region = 28 }
  0x29   : > { %950 = dma.done.wait (%p1052_p8), [#allocation3], 4224  }
  0x2a   : > { %952 = vsyncadd (%p1052_p8), [#allocation3], 4294963072  ;;  %s651_s28 = sshll.u32 %s644_s10, 3  ;;  %v960_v0 = vmov 0   ;;  %v278_v5 = vld [vmem:[#allocation2 + $0x8] sm:$0xff]  ;;  %v279_v6 = vld [vmem:[#allocation2 + $0x10] sm:$0xff] }
  0x2b   : > { %884 = vset.pattern.permute.xlu1 %v960_v0  ;;  %883 = vset.pattern.permute.xlu0 %v960_v0  ;;  %p151_p2 = scmp.lt.s32.totalorder %s651_s28, 15  ;;  %v280_v7 = vld [vmem:[#allocation2 + $0x18] sm:$0xff]  ;;  %v281_v8 = vld [vmem:[#allocation2 + $0x20] sm:$0xff]  ;;  %v797_v9 = vpack.c.bf16 %v279_v6, %v278_v5  ;;  %v282_v11 = vld [vmem:[#allocation2 + $0x28] sm:$0xff] }
  0x2c   : > { %v801_v10 = vpack.c.bf16 %v281_v8, %v280_v7  ;;  %v283_v12 = vld [vmem:[#allocation2 + $0x30] sm:$0xff]  ;;  %v284_v16 = vld [vmem:[#allocation2 + $0x38] sm:$0xff]  ;;  %v285_v17 = vld [vmem:[#allocation2 + $0x40] sm:$0xff] }
  0x2d   : > { %s1054_s28 = smov (!%p151_p2, %s651_s28), 15  ;;  %798 = vmatprep.subr.bf16.mxu0 %v797_v9  ;;  %v805_v15 = vpack.c.bf16 %v283_v12, %v282_v11  ;;  %v809_v20 = vpack.c.bf16 %v285_v17, %v284_v16  ;;  %v286_v21 = vld [vmem:[#allocation2 + $0x48] sm:$0xff]  ;;  %v287_v22 = vld [vmem:[#allocation2 + $0x50] sm:$0xff]  ;;  %v288_v24 = vld [vmem:[#allocation2 + $0x58] sm:$0xff] }
  0x2e   : > { %s652_s29 = sshll.u32 %s1054_s28, 3  ;;  %800 = vmatpush3.bf16.msra.mxu0 %v797_v9  ;;  %v813_v23 = vpack.c.bf16 %v287_v22, %v286_v21  ;;  %v289_v25 = vld [vmem:[#allocation2 + $0x60] sm:$0xff]  ;;  %v290_v27 = vld [vmem:[#allocation2 + $0x68] sm:$0xff]  ;;  %v291_v28 = vld [vmem:[#allocation2 + $0x70] sm:$0xff] }
  0x2f   : > { %s154_s4 = scalar_lea.vmem %s1042_s0, %s652_s29  ;;  %802 = vmatprep.subr.bf16.mxu0 %v801_v10  ;;  %v817_v26 = vpack.c.bf16 %v289_v25, %v288_v24  ;;  %v821_v29 = vpack.c.bf16 %v291_v28, %v290_v27  ;;  %v292_v30 = vld [vmem:[#allocation2 + $0x78] sm:$0xff]  ;;  %v293_v31 = vld [vmem:[#allocation2 + $0x80] sm:$0xff]  ;;  %v443_v33 = vld [vmem:[#allocation2 + $0x88] sm:$0xff]  ;;  %s160_s7 = scalar_lea.vmem %s1044_s2, %s652_s29 }
  0x30   : > { %v164_v1 = vld [vmem:[%s154_s4 + $0x10] sm:$0xff]  ;;  %v162_v2 = vld [vmem:[%s154_s4] sm:$0xff]  ;;  %v165_v3 = vld [vmem:[%s154_s4 + $0x18] sm:$0xff]  ;;  %v825_v32 = vpack.c.bf16 %v293_v31, %v292_v30 }
  0x31   : > { %186 = vperm.xlu1 %884, %v164_v1   ;;  %176 = vperm.xlu0 %883, %v162_v2   ;;  %v163_v4 = vld [vmem:[%s154_s4 + $0x8] sm:$0xff]  ;;  %v166_v14 = vld [vmem:[%s154_s4 + $0x20] sm:$0xff]  ;;  %v169_v18 = vld [vmem:[%s154_s4 + $0x38] sm:$0xff] }
  0x32   : > { %v167_v13 = vld [vmem:[%s154_s4 + $0x28] sm:$0xff]  ;;  %v168_v19 = vld [vmem:[%s154_s4 + $0x30] sm:$0xff]  ;;  %804 = vmatpush3.bf16.msra.mxu0 %v801_v10  ;;  %v445_v35 = vld [vmem:[#allocation2 + $0x98] sm:$0xff] }
  0x33   : > { %806 = vmatprep.subr.bf16.mxu0 %v805_v15  ;;  %v444_v34 = vld [vmem:[#allocation2 + $0x90] sm:$0xff]  ;;  %v446_v37 = vld [vmem:[#allocation2 + $0xa0] sm:$0xff] }
  0x34   : > { %v829_v36 = vpack.c.bf16 %v444_v34, %v443_v33  ;;  %v833_v38 = vpack.c.bf16 %v446_v37, %v445_v35  ;;  %v655_v39 = vld [vmem:[#allocation2] ss:$0 sm:$0xff]  ;;  %v656_v40 = vld [vmem:[#allocation2 + $0x1] ss:$0 sm:$0xff] }
  0x35   : > { %191 = vperm.xlu1 %884, %v165_v3   ;;  %181 = vperm.xlu0 %883, %v163_v4  }
  0x36   : > { %808 = vmatpush3.bf16.msra.mxu0 %v805_v15  ;;  %830 = vmatprep.subr.bf16.mxu1 %v829_v36 }
  0x37   : > { %810 = vmatprep.subr.bf16.mxu0 %v809_v20  ;;  %832 = vmatpush3.bf16.msra.mxu1 %v829_v36 }
  0x38   : > { %834 = vmatprep.subr.bf16.mxu1 %v833_v38 }
  0x39   : > { %201 = vperm.xlu1 %884, %v167_v13   ;;  %196 = vperm.xlu0 %883, %v166_v14  }
  0x3a   : > { %812 = vmatpush3.bf16.msra.mxu0 %v809_v20 }
  0x3b   : > { %814 = vmatprep.subr.bf16.mxu0 %v813_v23  ;;  %836 = vmatpush3.bf16.msra.mxu1 %v833_v38 }
  0x3d   : > { %211 = vperm.xlu1 %884, %v169_v18   ;;  %206 = vperm.xlu0 %883, %v168_v19  }
  0x3e   : > { %816 = vmatpush3.bf16.msra.mxu0 %v813_v23 }
  0x3f   : > { %818 = vmatprep.subr.bf16.mxu0 %v817_v26 }
  0x42   : > { %820 = vmatpush3.bf16.msra.mxu0 %v817_v26 }
  0x43   : > { %822 = vmatprep.subr.bf16.mxu0 %v821_v29 }
  0x46   : > { %824 = vmatpush3.bf16.msra.mxu0 %v821_v29 }
  0x47   : > { %826 = vmatprep.subr.bf16.mxu0 %v825_v32 }
  0x4a   : > { %828 = vmatpush3.bf16.msra.mxu0 %v825_v32 }
  0xb0   : > { %v187_v41 = vpop.permute.xlu1 %186  ;;  %v177_v42 = vpop.permute.xlu0 %176 }
  0xb1   : > { %v220_v43 = vmul.f32 %v655_v39, %v187_v41  ;;  %v218_v44 = vmul.f32 %v655_v39, %v177_v42  ;;  %v447_v41 = vld [vmem:[#allocation2 + $0xa8] sm:$0xff]  ;;  %v448_v42 = vld [vmem:[#allocation2 + $0xb0] sm:$0xff] }
  0xb3   : > { %v232_v45 = vadd.f32 %v656_v40, %v220_v43  ;;  %v230_v46 = vadd.f32 %v656_v40, %v218_v44  ;;  %v837_v43 = vpack.c.bf16 %v448_v42, %v447_v41  ;;  %v449_v44 = vld [vmem:[#allocation2 + $0xb8] sm:$0xff] }
  0xb4   : > { %v192_v47 = vpop.permute.xlu1 %191  ;;  %v182_v48 = vpop.permute.xlu0 %181 }
  0xb5   : > { %v240_v49 = vmul.f32 0.5, %v232_v45  ;;  %v221_v50 = vmul.f32 %v655_v39, %v192_v47  ;;  %v219_v51 = vmul.f32 %v655_v39, %v182_v48  ;;  %v238_v52 = vmul.f32 0.5, %v230_v46  ;;  %838 = vmatprep.subr.bf16.mxu1 %v837_v43  ;;  %v451_v47 = vld [vmem:[#allocation2 + $0xc8] sm:$0xff]  ;;  %v452_v48 = vld [vmem:[#allocation2 + $0xd0] sm:$0xff] }
  0xb6   : > { %840 = vmatpush3.bf16.msra.mxu1 %v837_v43 }
  0xb7   : > { %885 = vtanh.f32 %v240_v49  ;;  %v233_v53 = vadd.f32 %v656_v40, %v221_v50  ;;  %v231_v54 = vadd.f32 %v656_v40, %v219_v51  ;;  %v845_v49 = vpack.c.bf16 %v452_v48, %v451_v47  ;;  %v453_v50 = vld [vmem:[#allocation2 + $0xd8] sm:$0xff]  ;;  %v454_v51 = vld [vmem:[#allocation2 + $0xe0] sm:$0xff] }
  0xb8   : > { %v202_v55 = vpop.permute.xlu1 %201  ;;  %v197_v56 = vpop.permute.xlu0 %196  ;;  %887 = vtanh.f32 %v238_v52  ;;  %v849_v52 = vpack.c.bf16 %v454_v51, %v453_v50 }
  0xb9   : > { %v241_v57 = vmul.f32 0.5, %v233_v53  ;;  %v239_v58 = vmul.f32 0.5, %v231_v54  ;;  %v223_v59 = vmul.f32 %v655_v39, %v202_v55  ;;  %v222_v60 = vmul.f32 %v655_v39, %v197_v56  ;;  %v457_v56 = vld [vmem:[#allocation2 + $0xf8] sm:$0xff] }
  0xbb   : > { %889 = vtanh.f32 %v241_v57  ;;  %v235_v61 = vadd.f32 %v656_v40, %v223_v59  ;;  %v234_v62 = vadd.f32 %v656_v40, %v222_v60  ;;  %v458_v57 = vld [vmem:[#allocation2 + $0x100] sm:$0xff] }
  0xbc   : > { %891 = vtanh.f32 %v239_v58  ;;  %v212_v63 = vpop.permute.xlu1 %211  ;;  %v207_v0 = vpop.permute.xlu0 %206  ;;  %v857_v58 = vpack.c.bf16 %v458_v57, %v457_v56  ;;  %v657_v59 = vld [vmem:[#allocation2 + $0x2] ss:$0 sm:$0xff] }
  0xbd   : > { %v243_v1 = vmul.f32 0.5, %v235_v61  ;;  %v242_v2 = vmul.f32 0.5, %v234_v62  ;;  %v225_v3 = vmul.f32 %v655_v39, %v212_v63  ;;  %v224_v4 = vmul.f32 %v655_v39, %v207_v0 }
  0xbf   : > { %893 = vtanh.f32 %v243_v1  ;;  %v237_v5 = vadd.f32 %v656_v40, %v225_v3  ;;  %v236_v6 = vadd.f32 %v656_v40, %v224_v4 }
  0xc0   : > { %895 = vtanh.f32 %v242_v2 }
  0xc1   : > { %v886_v7 = vpop.eup %885  ;;  %v245_v8 = vmul.f32 0.5, %v237_v5  ;;  %v244_v9 = vmul.f32 0.5, %v236_v6 }
  0xc2   : > { %v888_v10 = vpop.eup %887  ;;  %v256_v12 = vadd.f32 1.0, %v886_v7 }
  0xc3   : > { %897 = vtanh.f32 %v245_v8  ;;  %v254_v11 = vadd.f32 1.0, %v888_v10 }
  0xc4   : > { %899 = vtanh.f32 %v244_v9  ;;  %v264_v19 = vmul.f32 0.5, %v256_v12 }
  0xc5   : > { %v890_v13 = vpop.eup %889  ;;  %v262_v14 = vmul.f32 0.5, %v254_v11 }
  0xc6   : > { %v892_v15 = vpop.eup %891  ;;  %v257_v16 = vadd.f32 1.0, %v890_v13  ;;  %v272_v27 = vmul.f32 %v264_v19, %v232_v45  ;;  %v450_v45 = vld [vmem:[#allocation2 + $0xc0] sm:$0xff] }
  0xc7   : > { %v270_v17 = vmul.f32 %v262_v14, %v230_v46  ;;  %v255_v18 = vadd.f32 1.0, %v892_v15  ;;  %v841_v46 = vpack.c.bf16 %v450_v45, %v449_v44 }
  0xc8   : > { %v265_v23 = vmul.f32 0.5, %v257_v16 }
  0xc9   : > { %v894_v20 = vpop.eup %893  ;;  %741 = vmatprep.mubr.f32.mxu0 %v270_v17  ;;  %v263_v21 = vmul.f32 0.5, %v255_v18  ;;  %842 = vmatprep.subr.bf16.mxu1 %v841_v46 }
  0xca   : > { %v896_v22 = vpop.eup %895  ;;  %v259_v26 = vadd.f32 1.0, %v894_v20  ;;  %v273_v31 = vmul.f32 %v265_v23, %v233_v53  ;;  %844 = vmatpush3.bf16.msra.mxu1 %v841_v46  ;;  %v455_v53 = vld [vmem:[#allocation2 + $0xe8] sm:$0xff] }
  0xcb   : > { %v271_v24 = vmul.f32 %v263_v21, %v231_v54  ;;  %v258_v25 = vadd.f32 1.0, %v896_v22  ;;  %846 = vmatprep.subr.bf16.mxu1 %v845_v49  ;;  %v456_v54 = vld [vmem:[#allocation2 + $0xf0] sm:$0xff] }
  0xcc   : > { %v267_v33 = vmul.f32 0.5, %v259_v26  ;;  %v853_v55 = vpack.c.bf16 %v456_v54, %v455_v53 }
  0xcd   : > { %v898_v28 = vpop.eup %897  ;;  %742 = vmatmul.mubr.f32.vlgmr.msra.gmra.mrb[0].mxu0 %v271_v24  ;;  %v266_v29 = vmul.f32 0.5, %v258_v25 }
  0xce   : > { %v900_v30 = vpop.eup %899  ;;  %744 = vmatprep.mubr.f32.mxu0 %v272_v27  ;;  %v261_v35 = vadd.f32 1.0, %v898_v28  ;;  %v275_v37 = vmul.f32 %v267_v33, %v235_v61  ;;  %848 = vmatpush3.bf16.msra.mxu1 %v845_v49 }
  0xcf   : > { %v274_v32 = vmul.f32 %v266_v29, %v234_v62  ;;  %v260_v34 = vadd.f32 1.0, %v900_v30  ;;  %850 = vmatprep.subr.bf16.mxu1 %v849_v52 }
  0xd0   : > { %v269_v39 = vmul.f32 0.5, %v261_v35 }
  0xd1   : > { %745 = vmatmul.mubr.f32.gmra.mrb[2].mxu0 %v273_v31  ;;  %v268_v36 = vmul.f32 0.5, %v260_v34 }
  0xd2   : > { %747 = vmatprep.mubr.f32.mxu0 %v274_v32  ;;  %v277_v40 = vmul.f32 %v269_v39, %v237_v5  ;;  %852 = vmatpush3.bf16.msra.mxu1 %v849_v52  ;;  %v658_v52 = vld [vmem:[#allocation2 + $0x3] ss:$0 sm:$0xff] }
  0xd3   : > { %v276_v38 = vmul.f32 %v268_v36, %v236_v6  ;;  %854 = vmatprep.subr.bf16.mxu1 %v853_v55 }
  0xd5   : > { %748 = vmatmul.mubr.f32.gmra.mrb[4].mxu0 %v275_v37 }
  0xd6   : > { %750 = vmatprep.mubr.f32.mxu0 %v276_v38  ;;  %856 = vmatpush3.bf16.msra.mxu1 %v853_v55 }
  0xd7   : > { %858 = vmatprep.subr.bf16.mxu1 %v857_v58 }
  0xd9   : > { %751 = vmatmul.mubr.f32.gmra.mrb[6].mxu0 %v277_v40 }
  0xda   : > { %860 = vmatpush3.bf16.msra.mxu1 %v857_v58 }
 0x1a0   : > { %v743_v60 = vpop.f32.mrb[0].mxu0 }
 0x1a1   : > { %v370_v61 = vadd.f32 %v743_v60, %v657_v59  ;;  %v364_v62 = vpop.f32.mrb[1].mxu0 }
 0x1a2   : > { %v365_v63 = vadd.f32 %v657_v59, %v364_v62 }
 0x1a3   : > { %v404_v0 = vmul.f32 0.5, %v370_v61 }
 0x1a4   : > { %v403_v1 = vmul.f32 0.5, %v365_v63  ;;  %v746_v2 = vpop.f32.mrb[2].mxu0 }
 0x1a5   : > { %901 = vtanh.f32 %v404_v0  ;;  %v380_v3 = vadd.f32 %v746_v2, %v657_v59  ;;  %v374_v4 = vpop.f32.mrb[3].mxu0 }
 0x1a6   : > { %903 = vtanh.f32 %v403_v1  ;;  %v375_v5 = vadd.f32 %v657_v59, %v374_v4 }
 0x1a7   : > { %v406_v6 = vmul.f32 0.5, %v380_v3 }
 0x1a8   : > { %v405_v7 = vmul.f32 0.5, %v375_v5  ;;  %v749_v8 = vpop.f32.mrb[4].mxu0 }
 0x1a9   : > { %905 = vtanh.f32 %v406_v6  ;;  %v390_v9 = vadd.f32 %v749_v8, %v657_v59  ;;  %v384_v10 = vpop.f32.mrb[5].mxu0 }
 0x1aa   : > { %907 = vtanh.f32 %v405_v7  ;;  %v385_v11 = vadd.f32 %v657_v59, %v384_v10 }
 0x1ab   : > { %v408_v12 = vmul.f32 0.5, %v390_v9 }
 0x1ac   : > { %v407_v13 = vmul.f32 0.5, %v385_v11  ;;  %v752_v14 = vpop.f32.mrb[6].mxu0 }
 0x1ad   : > { %909 = vtanh.f32 %v408_v12  ;;  %v400_v15 = vadd.f32 %v752_v14, %v657_v59  ;;  %v394_v16 = vpop.f32.mrb[7].mxu0 }
 0x1ae   : > { %911 = vtanh.f32 %v407_v13  ;;  %v395_v17 = vadd.f32 %v657_v59, %v394_v16 }
 0x1af   : > { %v902_v18 = vpop.eup %901  ;;  %v410_v19 = vmul.f32 0.5, %v400_v15 }
 0x1b0   : > { %v904_v20 = vpop.eup %903  ;;  %v420_v21 = vadd.f32 1.0, %v902_v18  ;;  %v409_v22 = vmul.f32 0.5, %v395_v17 }
 0x1b1   : > { %913 = vtanh.f32 %v410_v19  ;;  %v419_v23 = vadd.f32 1.0, %v904_v20 }
 0x1b2   : > { %v428_v24 = vmul.f32 0.5, %v420_v21  ;;  %915 = vtanh.f32 %v409_v22 }
 0x1b3   : > { %v906_v25 = vpop.eup %905  ;;  %v427_v26 = vmul.f32 0.5, %v419_v23 }
 0x1b4   : > { %v908_v27 = vpop.eup %907  ;;  %v422_v28 = vadd.f32 1.0, %v906_v25  ;;  %v436_v31 = vmul.f32 %v428_v24, %v370_v61 }
 0x1b5   : > { %v421_v29 = vadd.f32 1.0, %v908_v27  ;;  %v435_v30 = vmul.f32 %v427_v26, %v365_v63 }
 0x1b6   : > { %v430_v32 = vmul.f32 0.5, %v422_v28 }
 0x1b7   : > { %v910_v33 = vpop.eup %909  ;;  %v429_v34 = vmul.f32 0.5, %v421_v29  ;;  %785 = vmatprep.mubr.f32.mxu1 %v435_v30 }
 0x1b8   : > { %v912_v35 = vpop.eup %911  ;;  %v424_v36 = vadd.f32 1.0, %v910_v33  ;;  %786 = vmatmul.mubr.f32.vlgmr.msra.gmra.mrb[0].mxu1 %v436_v31  ;;  %v438_v39 = vmul.f32 %v430_v32, %v380_v3 }
 0x1b9   : > { %v437_v37 = vmul.f32 %v429_v34, %v375_v5  ;;  %v423_v38 = vadd.f32 1.0, %v912_v35 }
 0x1ba   : > { %v432_v40 = vmul.f32 0.5, %v424_v36 }
 0x1bb   : > { %v914_v41 = vpop.eup %913  ;;  %v431_v42 = vmul.f32 0.5, %v423_v38  ;;  %788 = vmatprep.mubr.f32.mxu1 %v437_v37 }
 0x1bc   : > { %v916_v43 = vpop.eup %915  ;;  %v426_v44 = vadd.f32 1.0, %v914_v41  ;;  %789 = vmatmul.mubr.f32.gmra.mrb[2].mxu1 %v438_v39  ;;  %v440_v47 = vmul.f32 %v432_v40, %v390_v9 }
 0x1bd   : > { %v439_v45 = vmul.f32 %v431_v42, %v385_v11  ;;  %v425_v46 = vadd.f32 1.0, %v916_v43 }
 0x1be   : > { %v434_v48 = vmul.f32 0.5, %v426_v44 }
 0x1bf   : > { %v433_v49 = vmul.f32 0.5, %v425_v46  ;;  %791 = vmatprep.mubr.f32.mxu1 %v439_v45 }
 0x1c0   : > { %792 = vmatmul.mubr.f32.gmra.mrb[4].mxu1 %v440_v47  ;;  %v442_v51 = vmul.f32 %v434_v48, %v400_v15 }
 0x1c1   : > { %v441_v50 = vmul.f32 %v433_v49, %v395_v17 }
 0x1c3   : > { %794 = vmatprep.mubr.f32.mxu1 %v441_v50 }
 0x1c4   : > { %795 = vmatmul.mubr.f32.gmra.mrb[6].mxu1 %v442_v51 }
 0x28b   : > { %v787_v53 = vpop.f32.mrb[0].mxu1 }
 0x28c   : > { %v535_v54 = vadd.f32 %v787_v53, %v658_v52  ;;  %v529_v55 = vpop.f32.mrb[1].mxu1 }
 0x28d   : > { %v530_v56 = vadd.f32 %v658_v52, %v529_v55 }
 0x28e   : > { %569 = vst [vmem:[%s160_s7 + $0x8] sm:$0xff] %v535_v54 }
 0x28f   : > { %568 = vst [vmem:[%s160_s7] sm:$0xff] %v530_v56  ;;  %v790_v57 = vpop.f32.mrb[2].mxu1 }
 0x290   : > { %v545_v58 = vadd.f32 %v790_v57, %v658_v52  ;;  %v539_v59 = vpop.f32.mrb[3].mxu1 }
 0x291   : > { %v540_v60 = vadd.f32 %v658_v52, %v539_v59 }
 0x292   : > { %571 = vst [vmem:[%s160_s7 + $0x18] sm:$0xff] %v545_v58 }
 0x293   : > { %570 = vst [vmem:[%s160_s7 + $0x10] sm:$0xff] %v540_v60  ;;  %v793_v61 = vpop.f32.mrb[4].mxu1 }
 0x294   : > { %v555_v62 = vadd.f32 %v793_v61, %v658_v52  ;;  %v549_v63 = vpop.f32.mrb[5].mxu1 }
 0x295   : > { %v550_v0 = vadd.f32 %v658_v52, %v549_v63 }
 0x296   : > { %573 = vst [vmem:[%s160_s7 + $0x28] sm:$0xff] %v555_v62 }
 0x297   : > { %572 = vst [vmem:[%s160_s7 + $0x20] sm:$0xff] %v550_v0  ;;  %v796_v1 = vpop.f32.mrb[6].mxu1 }
 0x298   : > { %v565_v2 = vadd.f32 %v796_v1, %v658_v52  ;;  %v559_v3 = vpop.f32.mrb[7].mxu1 }
 0x299   : > { %v560_v4 = vadd.f32 %v658_v52, %v559_v3 }
 0x29a   : > { %575 = vst [vmem:[%s160_s7 + $0x38] sm:$0xff] %v565_v2 }
 0x29b   : > { %574 = vst [vmem:[%s160_s7 + $0x30] sm:$0xff] %v560_v4 }
 0x29c PF: > { %s13_s9 = sadd.s32 1, %s955_s9  }
 0x29d   : > { %p10_p3 = scmp.ge.s32.totalorder %s13_s9, 4  }
 0x29f   :  { %12 = sbr.rel (!%p10_p3) target bundleno = 1 (0x1), region = 63 }
 0x2a6   :  { %598 = vsyncpa [#allocation3], 1 }
 0x2a7   :  { %600 = vsyncpa [#allocation3 + $0x1], 1 }

</bundles_post_ra>
